<compile_context>
chip_gen: v5e
topology: v5e:2x2
jax: 0.10.0
libtpu: 0.0.40
codegen_flags: <defaults>
</compile_context>

<pallas_src>
import functools

import jax
import jax.numpy as jnp
from jax.experimental import pallas as pl
from jax.experimental.pallas import tpu as pltpu

_LANE = 128
_TM_CAP = 512
_TN_CAP = 512
_SMALL_FALLBACK_ELEMS = 1 << 22   # M*N*K below this -> plain XLA GEMM


def _round_up(x, m):
    return ((x + m - 1) // m) * m


def _pick_tile(size, align, cap):
    """Largest tile (multiple of `align`, <= cap) that keeps padding waste low."""
    size_a = _round_up(size, align)
    if size_a <= cap:
        return size_a                       # one tile covers the whole dim
    best_t, best_pad = cap, _round_up(size_a, cap)
    for t in (cap // 2, cap // 4):
        if t < align:
            break
        pad = _round_up(size_a, t)
        if pad < best_pad:                  # strictly less padding only
            best_t, best_pad = t, pad
    return best_t


# -----------------------------------------------------------------------------
# Kernels.  out = x @ W + b  (W already transposed to (K, N) by prepare()).
# -----------------------------------------------------------------------------
def _arl_kernel_noacc(x_ref, w_ref, b_ref, o_ref, *, compute_dtype):
    """K fits in one tile: single MXU dot, bias fused, no scratch."""
    x = x_ref[...].astype(compute_dtype)
    o_ref[...] = (
        jnp.dot(x, w_ref[...], preferred_element_type=jnp.float32) + b_ref[...]
    ).astype(o_ref.dtype)


def _arl_kernel_acc(x_ref, w_ref, b_ref, o_ref, acc_ref, *, compute_dtype):
    """Large K: f32 accumulator across the K grid axis (last, 'arbitrary')."""
    k = pl.program_id(2)

    @pl.when(k == 0)
    def _():
        acc_ref[...] = jnp.zeros_like(acc_ref)

    acc_ref[...] += jnp.dot(
        x_ref[...].astype(compute_dtype), w_ref[...],
        preferred_element_type=jnp.float32)

    @pl.when(k == pl.num_programs(2) - 1)
    def _():
        # Bias fused into the final writeback; nn.Identity() is a no-op.
        o_ref[...] = (acc_ref[...] + b_ref[...]).astype(o_ref.dtype)


# -----------------------------------------------------------------------------
# One-time parameter preparation (do this at init, reuse across forwards).
# -----------------------------------------------------------------------------
def prepare_arl_params(weight, bias, compute_dtype=None):
    """Transpose, cast and lane-pad nn.Linear params ONCE.

    Args:
      weight: (D_out, D_in) PyTorch nn.Linear weight layout.
      bias:   (D_out,).
      compute_dtype: dtype fed to the MXU (accumulation is always float32).
        None -> bf16 if the weight is already bf16, else float32.
        jnp.bfloat16 is recommended on v6e/v7x when ~1e-2 relative error vs
        the f32 PyTorch module is acceptable; float32 matches it closely.
    """
    N, K = weight.shape
    assert bias.shape == (N,), bias.shape
    if compute_dtype is None:
        compute_dtype = (jnp.bfloat16 if weight.dtype == jnp.bfloat16
                         else jnp.float32)
    cd = jnp.dtype(compute_dtype)

    tk_cap = 2048 if cd.itemsize <= 2 else 1024
    tn = _pick_tile(N, _LANE, _TN_CAP)
    tk = _pick_tile(K, _LANE, tk_cap)
    Np, Kp = _round_up(N, tn), _round_up(K, tk)

    w_t = weight.T.astype(cd)                              # (K, N), cast once
    wp = (w_t if (Kp, Np) == (K, N)
          else jnp.zeros((Kp, Np), cd).at[:K, :N].set(w_t))
    b_f32 = bias.astype(jnp.float32)
    bp = b_f32.reshape(1, N)
    if Np != N:
        bp = jnp.zeros((1, Np), jnp.float32).at[:, :N].set(bp)

    return dict(wp=wp, bp=bp, w_t=w_t, b_f32=b_f32,
                N=N, K=K, Np=Np, Kp=Kp, tn=tn, tk=tk, compute_dtype=cd)


# -----------------------------------------------------------------------------
# Forward.
# -----------------------------------------------------------------------------
def arl_forward(x, params, *, force_pallas=False):
    """AdditiveResidualLearner forward: Identity(x @ W.T + b)."""
    out_dtype = x.dtype
    lead = x.shape[:-1]
    K, N = params["K"], params["N"]
    assert x.shape[-1] == K, (x.shape, K)
    x2 = x.reshape(-1, K)
    M = x2.shape[0]
    cd = params["compute_dtype"]

    # Tiny shapes: launch / padding overhead dominates; XLA's fused GEMM wins.
    if not force_pallas and M * N * K < _SMALL_FALLBACK_ELEMS:
        out = jnp.dot(x2.astype(cd), params["w_t"],
                      preferred_element_type=jnp.float32) + params["b_f32"]
        return out.astype(out_dtype).reshape(*lead, N)

    Np, Kp, tn, tk = params["Np"], params["Kp"], params["tn"], params["tk"]
    wp, bp = params["wp"], params["bp"]

    x_itemsize = jnp.dtype(x2.dtype).itemsize
    out_itemsize = jnp.dtype(out_dtype).itemsize
    # bf16 packs two rows per sublane -> align M tiles to 16 when any 2-byte
    # dtype is involved, else 8.
    sub = 16 if min(x_itemsize, cd.itemsize, out_itemsize) <= 2 else 8
    tm = _pick_tile(M, sub, _TM_CAP)
    Mp = _round_up(M, tm)

    # x stays in its own dtype (in-kernel cast); copy only if padding needed.
    xp = (x2 if (Mp, Kp) == (M, K)
          else jnp.zeros((Mp, Kp), x2.dtype).at[:M, :K].set(x2))

    kt = Kp // tk
    collapse_k = (kt == 1)

    # Double-buffered VMEM footprint -> scoped-VMEM limit with headroom,
    # clamped so it is always safe on v7x's 64 MiB physical VMEM.
    vmem = (2 * tm * tk * x_itemsize          # x tiles
            + 2 * tk * tn * cd.itemsize       # W tiles
            + 2 * tm * tn * out_itemsize      # out tiles
            + 2 * 8 * tn * 4)                 # bias tiles (sublane-padded)
    if not collapse_k:
        vmem += tm * tn * 4                   # f32 accumulator scratch
    vmem_limit = min(max(vmem + (8 << 20), 32 << 20), 56 << 20)

    cost = pl.CostEstimate(
        flops=2 * Mp * Np * Kp,
        transcendentals=0,
        bytes_accessed=(Mp * Kp * x_itemsize * (Np // tn)      # x re-reads
                        + Kp * Np * cd.itemsize * (Mp // tm)   # W re-reads
                        + Np * 4
                        + Mp * Np * out_itemsize),
    )

    if collapse_k:
        kernel = functools.partial(_arl_kernel_noacc, compute_dtype=cd)
        grid = (Mp // tm, Np // tn)
        in_specs = [
            pl.BlockSpec((tm, tk), lambda i, j: (i, 0)),
            pl.BlockSpec((tk, tn), lambda i, j: (0, j)),
            pl.BlockSpec((1, tn), lambda i, j: (0, j)),
        ]
        out_specs = pl.BlockSpec((tm, tn), lambda i, j: (i, j))
        scratch = []
        semantics = ("parallel", "parallel")
    else:
        kernel = functools.partial(_arl_kernel_acc, compute_dtype=cd)
        grid = (Mp // tm, Np // tn, kt)
        in_specs = [
            pl.BlockSpec((tm, tk), lambda i, j, k: (i, k)),
            pl.BlockSpec((tk, tn), lambda i, j, k: (k, j)),
            pl.BlockSpec((1, tn), lambda i, j, k: (0, j)),
        ]
        out_specs = pl.BlockSpec((tm, tn), lambda i, j, k: (i, j))
        scratch = [pltpu.VMEM((tm, tn), jnp.float32)]
        semantics = ("parallel", "parallel", "arbitrary")

    out = pl.pallas_call(
        kernel,
        out_shape=jax.ShapeDtypeStruct((Mp, Np), out_dtype),
        grid_spec=pltpu.PrefetchScalarGridSpec(
            num_scalar_prefetch=0,
            grid=grid,
            in_specs=in_specs,
            out_specs=out_specs,
            scratch_shapes=scratch,
        ),
        compiler_params=pltpu.CompilerParams(
            dimension_semantics=semantics,
            vmem_limit_bytes=vmem_limit,
        ),
        cost_estimate=cost,
    )(xp, wp, bp)

    if (Mp, Np) != (M, N):
        out = out[:M, :N]
    return out.reshape(*lead, N)


# -----------------------------------------------------------------------------
# Self-test
# -----------------------------------------------------------------------------
if __name__ == "__main__":
    key = jax.random.PRNGKey(0)
    kx, kw, kb, kx2, kw2, kb2 = jax.random.split(key, 6)

    # --- Module-scale test: batch=2, embedding_dim=32 ------------------------
    B, D = 2, 32
    x = jax.random.normal(kx, (B, D), dtype=jnp.float32)
    weight = 0.05 * jax.random.normal(kw, (D, D), dtype=jnp.float32)  # (out, in)
    bias = 0.01 * jax.random.normal(kb, (D,), dtype=jnp.float32)

    ref = jnp.dot(x, weight.T, precision=jax.lax.Precision.HIGHEST) + bias

    params = prepare_arl_params(weight, bias)          # f32 compute (exact-ish)

    # Default path (tiny shape -> XLA fallback).
    out_small = jax.block_until_ready(arl_forward(x, params))
    assert out_small.shape == ref.shape, (out_small.shape, ref.shape)
    assert jnp.allclose(out_small, ref, atol=5e-3, rtol=5e-3), "fallback mismatch"

    # Force the Pallas kernel on the same tiny shape (exercises padded path).
    out_pallas = jax.block_until_ready(arl_forward(x, params, force_pallas=True))
    assert out_pallas.shape == ref.shape, (out_pallas.shape, ref.shape)
    assert jnp.allclose(out_pallas, ref, atol=5e-3, rtol=5e-3), "pallas mismatch"

    # --- Aligned embedding dim: exercises the no-pad, K-collapsed Pallas path
    #     in f32 and the bf16-MXU path. ----------------------------------------
    M2, D2 = 256, 256
    x2 = jax.random.normal(kx2, (M2, D2), dtype=jnp.float32)
    w2 = 0.05 * jax.random.normal(kw2, (D2, D2), dtype=jnp.float32)
    b2 = 0.01 * jax.random.normal(kb2, (D2,), dtype=jnp.float32)
    ref2 = jnp.dot(x2, w2.T, precision=jax.lax.Precision.HIGHEST) + b2

    p_f32 = prepare_arl_params(w2, b2, compute_dtype=jnp.float32)
    out_f32 = jax.block_until_ready(arl_forward(x2, p_f32))
    assert jnp.allclose(out_f32, ref2, atol=5e-3, rtol=5e-3), "f32 pallas mismatch"

    p_bf16 = prepare_arl_params(w2, b2, compute_dtype=jnp.bfloat16)
    out_bf16 = jax.block_until_ready(arl_forward(x2, p_bf16))
    assert jnp.allclose(out_bf16, ref2, atol=3e-2, rtol=3e-2), "bf16 pallas mismatch"

    print("KERNEL_OK")
</pallas_src>

<mosaic_0001>
module attributes {stable_mosaic.version = 11 : i64} {
  func.func @_arl_kernel_noacc(%arg0: i32, %arg1: i32, %arg2: memref<8x128xf32, #tpu.memory_space<vmem>>, %arg3: memref<128x128xf32, #tpu.memory_space<vmem>>, %arg4: memref<1x128xf32, #tpu.memory_space<vmem>>, %arg5: memref<8x128xf32, #tpu.memory_space<vmem>>) attributes {dimension_semantics = [#tpu.dimension_semantics<parallel>, #tpu.dimension_semantics<parallel>], iteration_bounds = array<i64: 1, 1>, scalar_prefetch = 0 : i64, scratch_operands = 0 : i64, tpu.core_type = #tpu.core_type<tc>, window_params = [{transform_indices = @transform_0, window_bounds = array<i64: 8, 128>}, {transform_indices = @transform_1, window_bounds = array<i64: 128, 128>}, {transform_indices = @transform_2, window_bounds = array<i64: 1, 128>}, {transform_indices = @transform_3, window_bounds = array<i64: 8, 128>}]} {
    %c0 = arith.constant 0 : index
    %c0_0 = arith.constant 0 : index
    %0 = vector.load %arg2[%c0, %c0_0] : memref<8x128xf32, #tpu.memory_space<vmem>>, vector<8x128xf32>
    %c0_1 = arith.constant 0 : index
    %c0_2 = arith.constant 0 : index
    %1 = vector.load %arg3[%c0_1, %c0_2] : memref<128x128xf32, #tpu.memory_space<vmem>>, vector<128x128xf32>
    %cst = arith.constant dense<0.000000e+00> : vector<8x128xf32>
    %2 = tpu.matmul %0, %1, %cst {dimension_numbers = #tpu.dot_dimension_numbers<[1], [0], [0], [1], [0, 0, 1, 1], [], []>} : vector<8x128xf32>, vector<128x128xf32>, vector<8x128xf32> -> vector<8x128xf32>
    %c0_3 = arith.constant 0 : index
    %c0_4 = arith.constant 0 : index
    %3 = vector.load %arg4[%c0_3, %c0_4] : memref<1x128xf32, #tpu.memory_space<vmem>>, vector<1x128xf32>
    %4 = vector.broadcast %3 : vector<1x128xf32> to vector<8x128xf32>
    %5 = arith.addf %2, %4 : vector<8x128xf32>
    %c0_5 = arith.constant 0 : index
    %c0_6 = arith.constant 0 : index
    %6 = vector.load %arg5[%c0_5, %c0_6] : memref<8x128xf32, #tpu.memory_space<vmem>>, vector<8x128xf32>
    tpu.vector_store %arg5[%c0_5, %c0_6], %5 {strides = array<i32>} : memref<8x128xf32, #tpu.memory_space<vmem>>, vector<8x128xf32>,
    return
  }
  func.func @transform_0(%arg0: i32, %arg1: i32) -> (i32, i32) {
    %c0_i32 = arith.constant 0 : i32
    %c0_i32_0 = arith.constant 0 : i32
    return %arg0, %c0_i32 : i32, i32
  }
  func.func @transform_1(%arg0: i32, %arg1: i32) -> (i32, i32) {
    %c0_i32 = arith.constant 0 : i32
    %c0_i32_0 = arith.constant 0 : i32
    return %c0_i32, %arg1 : i32, i32
  }
  func.func @transform_2(%arg0: i32, %arg1: i32) -> (i32, i32) {
    %c0_i32 = arith.constant 0 : i32
    %c0_i32_0 = arith.constant 0 : i32
    return %c0_i32, %arg1 : i32, i32
  }
  func.func @transform_3(%arg0: i32, %arg1: i32) -> (i32, i32) {
    %c0_i32 = arith.constant 0 : i32
    return %arg0, %arg1 : i32, i32
  }
}

</mosaic_0001>

<bundles_post_ra>
// kernel: tpu_custom_call.1
= control target key start
LH: loop header
LB: loop body
LE: loop exit
PB: predicated region body
PF: predicated region fallthrough
CT: control target
= control target key end

     0   :  { %8 = vsyncpa [#allocation3], 0  ;;  %s226_s0 = inlined_call_operand.hbm [shape: f32[8,128], index: 0, kind: input, shape index: {}]   ;;  %s227_s1 = inlined_call_operand.hbm [shape: f32[128,128], index: 1, kind: input, shape index: {}]   ;;  %s228_s2 = inlined_call_operand.vmem [shape: f32[1,128], index: 2, kind: input, shape index: {}]   ;;  %s229_s3 = inlined_call_operand.hbm [shape: f32[8,128], index: 3, kind: output, shape index: {}]  }
   0x1   :  { %9 = vsyncpa [#allocation6], 0 }
   0x2   :  { %10 = vsyncpa [#allocation4], 0  ;;  %s16_s14 = sshll.u32 %s226_s0, 4  ;;  %s189_s15 = smov [#allocation2]   ;;  %s17_s14 = int_to_ptr.hbm [resolvable:$true] %s16_s14 }
   0x3   :  { %s18_s16 = sshll.u32 %s189_s15, 4  ;;  %s26_s19 = sshll.u32 %s227_s1, 4  ;;  %s19_s16 = int_to_ptr.vmem [resolvable:$true] %s18_s16  ;;  %s27_s19 = int_to_ptr.hbm [resolvable:$true] %s26_s19 }
   0x4   :  { %21 = dma.hbm_to_vmem [thread:$0]  %s17_s14, 128, %s19_s16, [#allocation3]  }
   0x5   :  { %s190_s20 = smov [#allocation5]   ;;  %s191_s22 = smov 128  }
   0x6   :  { %s28_s21 = sshll.u32 %s190_s20, 4  ;;  %s192_s23 = smov 8   ;;  %s29_s21 = int_to_ptr.vmem [resolvable:$true] %s28_s21 }
   0x7   :  { %34 = dma.hbm_to_vmem [thread:$0]  %s27_s19, 2048, %s29_s21, [#allocation6], %s191_s22, %s191_s22, %s192_s23  }
   0x8   :  { %183 = dma.done.wait [#allocation3], 128  }
   0x9   :  { %184 = vsyncadd [#allocation3], 4294967168 }
   0xa   :  { %185 = dma.done.wait [#allocation6], 2048  }
   0xb   :  { %186 = vsyncadd [#allocation6], 4294965248  ;;  %v61_v0 = vld [vmem:[#allocation5 + $0x78] sm:$0xff]  ;;  %v60_v1 = vld [vmem:[#allocation5 + $0x70] sm:$0xff]  ;;  %s193_s24 = smov [#allocation7]   ;;  %s94_s28 = sshll.u32 %s229_s3, 4  ;;  %s95_s28 = int_to_ptr.hbm [resolvable:$true] %s94_s28 }
   0xc   :  { %66 = vmatpush.msra.mxu0 %v61_v0  ;;  %v59_v2 = vld [vmem:[#allocation5 + $0x68] sm:$0xff]  ;;  %v58_v3 = vld [vmem:[#allocation5 + $0x60] sm:$0xff]  ;;  %v57_v4 = vld [vmem:[#allocation5 + $0x58] sm:$0xff]  ;;  %s92_s25 = sshll.u32 %s193_s24, 4  ;;  %s93_s25 = int_to_ptr.vmem [resolvable:$true] %s92_s25 }
   0xd   :  { %v56_v5 = vld [vmem:[#allocation5 + $0x50] sm:$0xff]  ;;  %v55_v6 = vld [vmem:[#allocation5 + $0x48] sm:$0xff]  ;;  %v54_v7 = vld [vmem:[#allocation5 + $0x40] sm:$0xff] }
   0xe   :  { %67 = vmatpush.msra.mxu0 %v60_v1  ;;  %v53_v8 = vld [vmem:[#allocation5 + $0x38] sm:$0xff]  ;;  %v52_v9 = vld [vmem:[#allocation5 + $0x30] sm:$0xff]  ;;  %v51_v10 = vld [vmem:[#allocation5 + $0x28] sm:$0xff] }
   0xf   :  { %v50_v11 = vld [vmem:[#allocation5 + $0x20] sm:$0xff]  ;;  %v49_v12 = vld [vmem:[#allocation5 + $0x18] sm:$0xff]  ;;  %v48_v13 = vld [vmem:[#allocation5 + $0x10] sm:$0xff] }
  0x10   :  { %68 = vmatpush.msra.mxu0 %v59_v2  ;;  %v47_v14 = vld [vmem:[#allocation5 + $0x8] sm:$0xff]  ;;  %v46_v15 = vld [vmem:[#allocation5] sm:$0xff]  ;;  %v45_v16 = vld [vmem:[#allocation2] sm:$0xff] }
  0x11   :  { %v110_v17 = vld [vmem:[%s228_s2] ss:$0 sm:$0xff] }
  0x12   :  { %69 = vmatpush.msra.mxu0 %v58_v3 }
  0x14   :  { %70 = vmatpush.msra.mxu0 %v57_v4 }
  0x16   :  { %71 = vmatpush.msra.mxu0 %v56_v5 }
  0x18   :  { %72 = vmatpush.msra.mxu0 %v55_v6 }
  0x1a   :  { %73 = vmatpush.msra.mxu0 %v54_v7 }
  0x1c   :  { %74 = vmatpush.msra.mxu0 %v53_v8 }
  0x1e   :  { %75 = vmatpush.msra.mxu0 %v52_v9 }
  0x20   :  { %76 = vmatpush.msra.mxu0 %v51_v10 }
  0x22   :  { %77 = vmatpush.msra.mxu0 %v50_v11 }
  0x24   :  { %78 = vmatpush.msra.mxu0 %v49_v12 }
  0x26   :  { %79 = vmatpush.msra.mxu0 %v48_v13 }
  0x28   :  { %80 = vmatpush.msra.mxu0 %v47_v14 }
  0x2a   :  { %81 = vmatpush.msra.mxu0 %v46_v15 }
  0x2b   :  { %82 = vmatmul.f32.vlgmr.msra.gmra.mxu0 %v45_v16 }
  0xa8   :  { %v83_v18 = vpop.f32.mrf.mxu0 }
  0xa9   :  { %v84_v19 = vadd.f32 %v110_v17, %v83_v18 }
  0xab   :  { %86 = vst [vmem:[#allocation7] sm:$0xff] %v84_v19 }
  0xac   :  { %97 = dma.vmem_to_hbm [thread:$0]  %s93_s25, 128, %s95_s28, [#allocation4]  }
  0xad   :  { %187 = dma.done.wait [#allocation4], 128  }
  0xae   :  { %188 = vsyncadd [#allocation4], 4294967168 }
  0xaf   :  { %102 = vsyncpa [#allocation3], 1 }
  0xb0   :  { %103 = vsyncpa [#allocation6], 1 }
  0xb1   :  { %104 = vsyncpa [#allocation4], 1 }

</bundles_post_ra>
